<compile_context>
chip_gen: v6e
topology: v6e:2x2x1
jax: 0.10.0
libtpu: 0.0.40
codegen_flags: <defaults>
</compile_context>

<pallas_src>
import math

import jax
import jax.numpy as jnp
import numpy as np
from jax.experimental import pallas as pl
from jax.experimental.pallas import tpu as pltpu


def _fourier_kernel(xg_ref, sel_ref, sp_ref, out_ref):
    """Grouped-row FourierFeatures tile.

    xg_ref : (tm, g*C)            grouped input rows (original dtype)
    sel_ref: (g*C, g*2*C*L) bf16  constant 0/1 lane-selection matrix (resident)
    sp_ref : (2, g*2*C*L)   f32   row 0 = 2**lvl*pi scale, row 1 = phase {0,-pi/2}
    out_ref: (tm, g*2*C*L)        grouped [cos|sin] output rows
    """
    x = xg_ref[...].astype(jnp.float32)

    # Exact 3-way bf16 split of x: h1 + h2 + h3 reconstructs the f32 value to
    # ~2**-25 relative, so three single-pass bf16 matmuls against the 0/1
    # selection matrix (exact in bf16) with f32 accumulation carry x through
    # the MXU essentially bit-exactly -- half the MXU work of Precision.HIGHEST.
    h1 = x.astype(jnp.bfloat16)
    r1 = x - h1.astype(jnp.float32)
    h2 = r1.astype(jnp.bfloat16)
    h3 = (r1 - h2.astype(jnp.float32)).astype(jnp.bfloat16)

    e = sel_ref[...]
    gathered = jnp.dot(h1, e, preferred_element_type=jnp.float32)
    gathered = gathered + jnp.dot(h2, e, preferred_element_type=jnp.float32)
    gathered = gathered + jnp.dot(h3, e, preferred_element_type=jnp.float32)

    scale = sp_ref[0:1, :]   # (1, w_grp), broadcasts over rows
    phase = sp_ref[1:2, :]
    # cos(t) for the cos half, cos(t - pi/2) = sin(t) for the sin half.
    # TODO(synk): VALU-bound configs (v7x) could use the double-angle recursion
    # across levels (one cos+sin per (row, channel)) instead of a full cos here.
    out_ref[...] = jnp.cos(gathered * scale + phase).astype(out_ref.dtype)


def _build_constants(channels: int, levels: int, group: int):
    """0/1 selection matrix + per-lane scale/phase rows for the grouped layout."""
    c, lv, g = channels, levels, group
    cl = c * lv
    w_out = 2 * cl
    w_grp = g * w_out
    gc = g * c

    j = np.arange(w_grp)
    r = j // w_out               # which original row inside the group
    jj = j % w_out               # column in the original (2*C*L) output
    half = jj // cl              # 0 = cos half, 1 = sin half
    k = jj % cl
    ch = k // lv                 # channel
    lvl = k % lv                 # frequency level
    src = r * c + ch             # source lane in the grouped input

    sel = (np.arange(gc)[:, None] == src[None, :]).astype(np.float32)
    scale_row = np.pi * (2.0 ** lvl)
    phase_row = half.astype(np.float64) * (-np.pi / 2.0)
    sp = np.stack([scale_row, phase_row]).astype(np.float32)
    return jnp.asarray(sel, dtype=jnp.bfloat16), jnp.asarray(sp)


def fourier_features(x: jax.Array, levels: int, *, block_rows: int = 4096,
                     out_dtype=None, lane_multiple: int = 256,
                     vmem_block_budget: int = 16 * 1024 * 1024) -> jax.Array:
    """Pallas TPU FourierFeatures forward. x: (N, C) -> (N, 2*C*levels)."""
    if levels < 1:
        raise ValueError("levels must be >= 1")
    n, c = x.shape
    out_dtype = jnp.dtype(out_dtype) if out_dtype is not None else jnp.dtype(x.dtype)
    cl = c * levels
    w_out = 2 * cl

    # Group g rows so the grouped output width is a multiple of `lane_multiple`
    # lanes (256 fills the v6e/v7x MXU; always a multiple of the 128-lane vreg
    # so output stores are full/unmasked; no loss on v5e's 128-wide MXU).
    g = lane_multiple // math.gcd(w_out, lane_multiple)
    gc = g * c
    w_grp = g * w_out

    # Pad only when N is not a multiple of the (small) group size; the common
    # case needs no pad, and the row-major regroup reshape is a free relabel.
    # TODO(synk): a fully copy-free ragged tail for N % g != 0 would need an
    # Element/BoundedSlice index_map; jnp.pad is only taken on that rare path.
    rem = n % g
    x_p = jnp.pad(x, ((0, g - rem), (0, 0))) if rem else x
    n_rows = x_p.shape[0]
    n_g = n_rows // g
    x_g = x_p.reshape(n_g, gc)

    sel, sp = _build_constants(c, levels, g)

    # Row tile from a VMEM byte budget: double-buffered in/out blocks plus f32
    # intermediates headroom (fits v7x's 64 MiB / 32 MiB-scoped VMEM as well as
    # v5e/v6e for any (C, levels) combination).
    in_itemsize = jnp.dtype(x.dtype).itemsize
    out_itemsize = out_dtype.itemsize
    row_align = 16 if out_itemsize < 4 else 8
    in_row = max(gc * in_itemsize, 128 * 4)          # lane-padded VMEM row
    out_row = w_grp * out_itemsize
    interm_row = 4 * w_grp * 4                       # f32 temporaries headroom
    const_bytes = 2 * (gc * w_grp * 2 + 8 * w_grp * 4)
    tm_cap = max(row_align,
                 (vmem_block_budget - const_bytes) // (2 * (in_row + out_row) + interm_row))
    tm = min(block_rows, int(tm_cap))
    tm = max(row_align, (tm // row_align) * row_align)
    if n_g <= tm:
        tm = n_g                                     # single block == full extent
    grid = (pl.cdiv(n_g, tm),)

    out_g = pl.pallas_call(
        _fourier_kernel,
        out_shape=jax.ShapeDtypeStruct((n_g, w_grp), out_dtype),
        grid_spec=pltpu.PrefetchScalarGridSpec(
            num_scalar_prefetch=0,
            grid=grid,
            in_specs=[
                pl.BlockSpec((tm, gc), lambda i: (i, 0)),
                pl.BlockSpec((gc, w_grp), lambda i: (0, 0)),   # resident constant
                pl.BlockSpec((2, w_grp), lambda i: (0, 0)),    # resident constant
            ],
            out_specs=pl.BlockSpec((tm, w_grp), lambda i: (i, 0)),
        ),
        compiler_params=pltpu.CompilerParams(
            # TODO(synk): verify the single parallel axis shards across v7x's 2
            # TensorCores; fall back to pltpu.CORE_PARALLEL / core_map if not.
            dimension_semantics=("parallel",),
            vmem_limit_bytes=40 * 1024 * 1024,
        ),
    )(x_g, sel, sp)

    out = out_g.reshape(n_rows, w_out)               # free row-major un-group
    return out[:n] if n_rows != n else out


if __name__ == "__main__":
    key = jax.random.PRNGKey(0)

    def reference(x, levels):
        # Pure-JAX reference mirroring the PyTorch forward exactly.
        scale = jnp.tile(2.0 ** jnp.arange(levels, dtype=jnp.float32) * jnp.pi, x.shape[1])
        args = jnp.repeat(x, levels, axis=1) * scale
        return jnp.concatenate([jnp.cos(args), jnp.sin(args)], axis=1)

    # Main check: 64 points with 2-D coordinates, 4 frequency levels.
    N, C, LEVELS = 64, 2, 4
    x = jax.random.uniform(key, (N, C), dtype=jnp.float32, minval=-1.0, maxval=1.0)
    out = jax.block_until_ready(fourier_features(x, LEVELS))
    ref = reference(x, LEVELS)
    assert out.shape == (N, 2 * C * LEVELS), out.shape
    assert jnp.allclose(out, ref, atol=1e-5, rtol=1e-5), float(jnp.max(jnp.abs(out - ref)))

    # Ragged N (exercises the pad-to-group tail path).
    x2 = jax.random.uniform(jax.random.PRNGKey(1), (37, C), dtype=jnp.float32,
                            minval=-1.0, maxval=1.0)
    out2 = jax.block_until_ready(fourier_features(x2, LEVELS))
    assert jnp.allclose(out2, reference(x2, LEVELS), atol=1e-5, rtol=1e-5)

    # Multi-step grid with a ragged last block (exercises the cdiv-grid path).
    x3 = jax.random.uniform(jax.random.PRNGKey(2), (320, C), dtype=jnp.float32,
                            minval=-1.0, maxval=1.0)
    out3 = jax.block_until_ready(fourier_features(x3, LEVELS, block_rows=8))
    assert jnp.allclose(out3, reference(x3, LEVELS), atol=1e-5, rtol=1e-5)

    print("KERNEL_OK")
</pallas_src>

<mosaic_0001>
module attributes {stable_mosaic.version = 11 : i64} {
  func.func @_fourier_kernel(%arg0: i32, %arg1: memref<4x32xf32, #tpu.memory_space<vmem>>, %arg2: memref<32x256xbf16, #tpu.memory_space<vmem>>, %arg3: memref<2x256xf32, #tpu.memory_space<vmem>>, %arg4: memref<4x256xf32, #tpu.memory_space<vmem>>) attributes {dimension_semantics = [#tpu.dimension_semantics<parallel>], iteration_bounds = array<i64: 1>, scalar_prefetch = 0 : i64, scratch_operands = 0 : i64, tpu.core_type = #tpu.core_type<tc>, window_params = [{transform_indices = @transform_0, window_bounds = array<i64: 4, 32>}, {pipeline_mode = #tpu.pipeline_mode<synchronous>, transform_indices = @transform_1, window_bounds = array<i64: 32, 256>}, {pipeline_mode = #tpu.pipeline_mode<synchronous>, transform_indices = @transform_2, window_bounds = array<i64: 2, 256>}, {transform_indices = @transform_3, window_bounds = array<i64: 4, 256>}]} {
    %c0 = arith.constant 0 : index
    %c0_0 = arith.constant 0 : index
    %0 = vector.load %arg1[%c0, %c0_0] : memref<4x32xf32, #tpu.memory_space<vmem>>, vector<4x32xf32>
    %1 = arith.truncf %0 : vector<4x32xf32> to vector<4x32xbf16>
    %2 = arith.extf %1 : vector<4x32xbf16> to vector<4x32xf32>
    %3 = arith.subf %0, %2 : vector<4x32xf32>
    %4 = arith.truncf %3 : vector<4x32xf32> to vector<4x32xbf16>
    %5 = arith.extf %4 : vector<4x32xbf16> to vector<4x32xf32>
    %6 = arith.subf %3, %5 : vector<4x32xf32>
    %7 = arith.truncf %6 : vector<4x32xf32> to vector<4x32xbf16>
    %c0_1 = arith.constant 0 : index
    %c0_2 = arith.constant 0 : index
    %8 = vector.load %arg2[%c0_1, %c0_2] : memref<32x256xbf16, #tpu.memory_space<vmem>>, vector<32x256xbf16>
    %cst = arith.constant dense<0.000000e+00> : vector<4x256xf32>
    %9 = tpu.matmul %1, %8, %cst {dimension_numbers = #tpu.dot_dimension_numbers<[1], [0], [0], [1], [0, 0, 1, 1], [], []>} : vector<4x32xbf16>, vector<32x256xbf16>, vector<4x256xf32> -> vector<4x256xf32>
    %cst_3 = arith.constant dense<0.000000e+00> : vector<4x256xf32>
    %10 = tpu.matmul %4, %8, %cst_3 {dimension_numbers = #tpu.dot_dimension_numbers<[1], [0], [0], [1], [0, 0, 1, 1], [], []>} : vector<4x32xbf16>, vector<32x256xbf16>, vector<4x256xf32> -> vector<4x256xf32>
    %11 = arith.addf %9, %10 : vector<4x256xf32>
    %cst_4 = arith.constant dense<0.000000e+00> : vector<4x256xf32>
    %12 = tpu.matmul %7, %8, %cst_4 {dimension_numbers = #tpu.dot_dimension_numbers<[1], [0], [0], [1], [0, 0, 1, 1], [], []>} : vector<4x32xbf16>, vector<32x256xbf16>, vector<4x256xf32> -> vector<4x256xf32>
    %13 = arith.addf %11, %12 : vector<4x256xf32>
    %c0_5 = arith.constant 0 : index
    %c0_6 = arith.constant 0 : index
    %14 = vector.load %arg3[%c0_5, %c0_6] : memref<2x256xf32, #tpu.memory_space<vmem>>, vector<1x256xf32>
    %c1 = arith.constant 1 : index
    %c0_7 = arith.constant 0 : index
    %15 = vector.load %arg3[%c1, %c0_7] : memref<2x256xf32, #tpu.memory_space<vmem>>, vector<1x256xf32>
    %16 = vector.broadcast %14 : vector<1x256xf32> to vector<4x256xf32>
    %17 = arith.mulf %13, %16 : vector<4x256xf32>
    %18 = vector.broadcast %15 : vector<1x256xf32> to vector<4x256xf32>
    %19 = arith.addf %17, %18 : vector<4x256xf32>
    %20 = math.cos %19 : vector<4x256xf32>
    %c0_8 = arith.constant 0 : index
    %c0_9 = arith.constant 0 : index
    %21 = vector.load %arg4[%c0_8, %c0_9] : memref<4x256xf32, #tpu.memory_space<vmem>>, vector<4x256xf32>
    tpu.vector_store %arg4[%c0_8, %c0_9], %20 {strides = array<i32>} : memref<4x256xf32, #tpu.memory_space<vmem>>, vector<4x256xf32>,
    return
  }
  func.func @transform_0(%arg0: i32) -> (i32, i32) {
    %c0_i32 = arith.constant 0 : i32
    %c0_i32_0 = arith.constant 0 : i32
    return %arg0, %c0_i32 : i32, i32
  }
  func.func @transform_1(%arg0: i32) -> (i32, i32) {
    %c0_i32 = arith.constant 0 : i32
    %c0_i32_0 = arith.constant 0 : i32
    %c0_i32_1 = arith.constant 0 : i32
    return %c0_i32, %c0_i32_0 : i32, i32
  }
  func.func @transform_2(%arg0: i32) -> (i32, i32) {
    %c0_i32 = arith.constant 0 : i32
    %c0_i32_0 = arith.constant 0 : i32
    %c0_i32_1 = arith.constant 0 : i32
    return %c0_i32, %c0_i32_0 : i32, i32
  }
  func.func @transform_3(%arg0: i32) -> (i32, i32) {
    %c0_i32 = arith.constant 0 : i32
    %c0_i32_0 = arith.constant 0 : i32
    return %arg0, %c0_i32 : i32, i32
  }
}

</mosaic_0001>

<bundles_post_ra>
// kernel: tpu_custom_call.1
= control target key start
LH: loop header
LB: loop body
LE: loop exit
PB: predicated region body
PF: predicated region fallthrough
CT: control target
= control target key end

     0   :  { %8 = vsyncpa [#allocation3], 0  ;;  %s746_s0 = inlined_call_operand.hbm [shape: f32[4,32], index: 0, kind: input, shape index: {}]   ;;  %s747_s1 = inlined_call_operand.hbm [shape: bf16[32,256], index: 1, kind: input, shape index: {}]   ;;  %s748_s2 = inlined_call_operand.hbm [shape: f32[2,256], index: 2, kind: input, shape index: {}]   ;;  %s749_s3 = inlined_call_operand.hbm [shape: f32[4,256], index: 3, kind: output, shape index: {}]  }
   0x1   :  { %9 = vsyncpa [#allocation6], 0 }
   0x2   :  { %10 = vsyncpa [#allocation4], 0  ;;  %s612_s12 = smov [#allocation5]  }
   0x3   :  { %s26_s13 = sshll.u32 %s612_s12, 4  ;;  %s27_s13 = int_to_ptr.vmem [resolvable:$true] %s26_s13 }
   0x4   :  { %s534_s14 = scalar_lea.vmem %s27_s13, 512  ;;  %p539_p1 = scmp.lt.s32.totalorder %s27_s13, %s27_s13 }
   0x5   :  { %p535_p0 = scmp.ne.s32.totalorder %s27_s13, %s534_s14  ;;  %p540_p2 = scmp.lt.s32.totalorder %s534_s14, %s534_s14 }
   0x7   :  { %p541_p3 = por %p540_p2, %p539_p1 }
   0x9   :  { %p542_p4 = pnand %p541_p3, %p535_p0 }
   0xb   :  { %545 = shalt.err (!%p542_p4)
}
   0xc   :  { %s613_s15 = smov 128   ;;  %s614_s16 = smov 8  }
   0xd   :  { %32 = dma.hbm_to_vmem [thread:$0]  %s747_s1, 512, %s27_s13, [#allocation6], %s613_s15, %s613_s15, %s614_s16  }
   0xe   :  { %s615_s19 = smov [#allocation2]   ;;  %s616_s21 = smov [#allocation7]  }
   0xf   :  { %s17_s20 = sshll.u32 %s615_s19, 4  ;;  %s39_s22 = sshll.u32 %s616_s21, 4  ;;  %s18_s20 = int_to_ptr.vmem [resolvable:$true] %s17_s20  ;;  %s40_s22 = int_to_ptr.vmem [resolvable:$true] %s39_s22 }
  0x10   :  { %s554_s23 = scalar_lea.vmem %s18_s20, 64  ;;  %p559_p6 = scmp.lt.s32.totalorder %s18_s20, %s18_s20 }
  0x11   :  { %p555_p5 = scmp.ne.s32.totalorder %s18_s20, %s554_s23  ;;  %p560_p7 = scmp.lt.s32.totalorder %s554_s23, %s554_s23 }
  0x13   :  { %p561_p8 = por %p560_p7, %p559_p6 }
  0x15   :  { %p562_p9 = pnand %p561_p8, %p555_p5 }
  0x17   :  { %565 = shalt.err (!%p562_p9)
}
  0x18   :  { %20 = dma.hbm_to_vmem [thread:$0]  %s746_s0, 64, %s18_s20, [#allocation3]  }
  0x19   :  { %s574_s26 = scalar_lea.vmem %s40_s22, 64  ;;  %p579_p11 = scmp.lt.s32.totalorder %s40_s22, %s40_s22 }
  0x1a   :  { %p575_p10 = scmp.ne.s32.totalorder %s40_s22, %s574_s26  ;;  %p580_p12 = scmp.lt.s32.totalorder %s574_s26, %s574_s26 }
  0x1c   :  { %p581_p13 = por %p580_p12, %p579_p11 }
  0x1e   :  { %p582_p0 = pnand %p581_p13, %p575_p10 }
  0x20   :  { %585 = shalt.err (!%p582_p0)
}
  0x21   :  { %42 = dma.hbm_to_vmem [thread:$0]  %s748_s2, 64, %s40_s22, [#allocation6]  }
  0x22   :  { %606 = dma.done.wait [#allocation3], 64  }
  0x23   :  { %607 = vsyncadd [#allocation3], 4294967232 }
  0x24   :  { %608 = dma.done.wait [#allocation6], 576  }
  0x25   :  { %609 = vsyncadd [#allocation6], 4294966720  ;;  %v617_v0 = vmov 0   ;;  %v512_v1 = vld [vmem:[#allocation5 + $0x14] ss:$8 sps:$4 sm:$0xff]   ;;  %vm85_vm0 = vcmask 261120   ;;  %v224_v13 = vlaneseq }
  0x26   :  { %121 = vmatprep.mubr.bf16.mxu0 %v617_v0  ;;  %165 = vmatprep.mubr.bf16.mxu1 %v617_v0  ;;  %v514_v2 = vld [vmem:[#allocation5 + $0x10] ss:$8 sps:$4 sm:$0xff]   ;;  %v515_v3 = vld [vmem:[#allocation5 + $0x4] ss:$8 sps:$4 sm:$0xff]   ;;  %v53_v4 = vld [vmem:[#allocation2] sm:$0xf] }
  0x27   :  { %101 = vmatprep.subr.bf16.mxu0 %v512_v1  ;;  %145 = vmatprep.subr.bf16.mxu1 %v512_v1  ;;  %v517_v5 = vld [vmem:[#allocation5] ss:$8 sps:$4 sm:$0xff]   ;;  %v54_v6 = vpack.c.bf16 %v53_v4, %v53_v4  ;;  %v225_v15 = vshrl.u32 %v224_v13, 7  ;;  %v618_v63 = vmov 2102212464   ;;  %s624_s0 = smov [#allocation8]  }
  0x28   :  { %102 = vmatpush1.bf16.msra.mxu0 %v514_v2  ;;  %146 = vmatpush1.bf16.msra.mxu1 %v514_v2  ;;  %v220_v22 = vld [vmem:[#allocation7] ss:$2 sm:$0x3]  ;;  %v222_v26 = vld [vmem:[#allocation7 + $0x1] ss:$2 sm:$0x3] }
  0x29   :  { %103 = vmatprep.subr.bf16.mxu0 %v515_v3  ;;  %147 = vmatprep.subr.bf16.mxu1 %v515_v3  ;;  %v55_v7 = vunpack.c.l.bf16 %v54_v6  ;;  %v226_v20 = vsub.s32 0, %v225_v15  ;;  %v230_v24 = vsub.s32 1, %v225_v15  ;;  %s466_s2 = sshll.u32 %s624_s0, 4  ;;  %s467_s2 = int_to_ptr.vmem [resolvable:$true] %s466_s2 }
  0x2a   :  { %s586_s28 = scalar_lea.vmem %s467_s2, 128  ;;  %p591_p2 = scmp.lt.s32.totalorder %s467_s2, %s467_s2 }
  0x2b   :  { %v56_v8 = vsub.f32 %v53_v4, %v55_v7  ;;  %v227_v28 = vrot.slane %v220_v22, %v226_v20  ;;  %v240_v32 = vrot.slane %v222_v26, %v226_v20  ;;  %v231_v33 = vrot.slane %v220_v22, %v230_v24  ;;  %p587_p1 = scmp.ne.s32.totalorder %s467_s2, %s586_s28  ;;  %p592_p3 = scmp.lt.s32.totalorder %s586_s28, %s586_s28 }
  0x2c   :  { %104 = vmatpush1.bf16.msra.mxu0 %v517_v5  ;;  %148 = vmatpush1.bf16.msra.mxu1 %v517_v5  ;;  %v244_v37 = vrot.slane %v222_v26, %v230_v24  ;;  %v621_v7 = vmov 683565275  }
  0x2d   :  { %189 = vmatprep.subr.bf16.mxu0 %v512_v1  ;;  %v57_v9 = vpack.c.bf16 %v56_v8, %v56_v8  ;;  %v619_v1 = vmov 920167782   ;;  %p593_p4 = por %p592_p3, %p591_p2 }
  0x2f   :  { %481 = vmatmul.mubr.msk.bf16.vlgmr.msra.gmra.mxu1 %vm85_vm0, %v54_v6  ;;  %v58_v10 = vunpack.c.l.bf16 %v57_v9  ;;  %480 = vmatmul.mubr.msk.bf16.vlgmr.msra.gmra.mxu0 %vm85_vm0, %v57_v9  ;;  %v622_v9 = vmov 2475754826   ;;  %p594_p5 = pnand %p593_p4, %p587_p1 }
  0x30   :  { %190 = vmatpush1.bf16.msra.mxu0 %v514_v2  ;;  %209 = vmatprep.mubr.bf16.mxu0 %v617_v0 }
  0x31   :  { %v59_v11 = vsub.f32 %v56_v8, %v58_v10  ;;  %191 = vmatprep.subr.bf16.mxu0 %v515_v3 }
  0x33   :  { %v60_v12 = vpack.c.bf16 %v59_v11, %v59_v11 }
  0x34   :  { %192 = vmatpush1.bf16.msra.mxu0 %v517_v5  ;;  %v620_v5 = vmov 1326507024  }
  0x37   :  { %482 = vmatmul.mubr.msk.bf16.vlgmr.msra.gmra.mxu0 %vm85_vm0, %v60_v12 }
  0xef   :  { %v167_v14 = vpop.f32.mrf.mxu1  ;;  %v123_v16 = vpop.f32.mrf.mxu0 }
  0xf0   :  { %v168_v27 = vadd.f32 %v167_v14, %v123_v16 }
  0xf1   :  { %v169_v17 = vpop.f32.mrf.mxu1  ;;  %v125_v18 = vpop.f32.mrf.mxu0 }
  0xf2   :  { %v170_v30 = vadd.f32 %v169_v17, %v125_v18  ;;  %v623_v18 = vmov 2131351028  }
  0xf3   :  { %v171_v19 = vpop.f32.mrf.mxu1  ;;  %v127_v21 = vpop.f32.mrf.mxu0 }
  0xf5   :  { %v172_v23 = vpop.f32.mrf.mxu1  ;;  %v128_v25 = vpop.f32.mrf.mxu0 }
  0xf7   :  { %v211_v29 = vpop.f32.mrf.mxu0 }
  0xf8   :  { %v218_v31 = vadd.f32 %v211_v29, %v168_v27 }
  0xf9   :  { %v213_v34 = vpop.f32.mrf.mxu0 }
  0xfa   :  { %v234_v35 = vmul.f32 %v227_v28, %v218_v31  ;;  %v219_v36 = vadd.f32 %v213_v34, %v170_v30 }
  0xfb   :  { %v215_v38 = vpop.f32.mrf.mxu0 }
  0xfc   :  { %v654_v39 = vadd.f32 %v240_v32, %v234_v35  ;;  %v235_v40 = vmul.f32 %v231_v33, %v219_v36 }
  0xfd   :  { %v216_v41 = vpop.f32.mrf.mxu0 }
  0xfe   :  { %v252_v42 = vand.u32 2139095040, %v654_v39  ;;  %v657_v43 = vadd.f32 %v244_v37, %v235_v40  ;;  %v249_v44 = vand.u32 2147483647, %v654_v39  ;;  %vm251_vm15 = vcmp.lt.s32.totalorder %v654_v39, 0 }
 0x100   :  { %v253_v45 = vshrl.u32 %v252_v42, 23  ;;  %v355_v46 = vand.u32 2139095040, %v657_v43  ;;  %v256_v49 = vand.u32 8388607, %v249_v44  ;;  %v352_v50 = vand.u32 2147483647, %v657_v43 }
 0x101   :  { %vm724_vm0 = vcmp.le.f32.partialorder %v249_v44, 0.7853982 }
 0x102   :  { %v483_v47 = vadd.s32 4294967169, %v253_v45  ;;  %v356_v48 = vshrl.u32 %v355_v46, 23  ;;  %v257_v54 = vor.u32 8388608, %v256_v49  ;;  %v359_v55 = vand.u32 8388607, %v352_v50 }
 0x104   :  { %v259_v51 = vadd.s32 1, %v483_v47  ;;  %v487_v52 = vadd.s32 4294967169, %v356_v48  ;;  %v666_v61 = vshll.u32 %v257_v54, 8  ;;  %v360_v62 = vor.u32 8388608, %v359_v55 }
 0x106   :  { %vm260_vm1 = vcmp.gt.s32.totalorder %v259_v51, 0  ;;  %v362_v53 = vadd.s32 1, %v487_v52 }
 0x107   :  { %v261_v56 = vsel %vm260_vm1, %v259_v51, 0  ;;  %v400_v51 = vshll.u32 %v360_v62, 8  ;;  %vm354_vm1 = vcmp.lt.s32.totalorder %v657_v43, 0 }
 0x108   :  { %v262_v57 = vshrl.u32 %v261_v56, 5  ;;  %v263_v58 = vand.u32 31, %v261_v56  ;;  %vm363_vm2 = vcmp.gt.s32.totalorder %v362_v53, 0 }
 0x109   :  { %v364_v59 = vsel %vm363_vm2, %v362_v53, 0  ;;  %vm353_vm2 = vcmp.le.f32.partialorder %v352_v50, 0.7853982 }
 0x10a   :  { %v264_v60 = vsub.s32 32, %v263_v58  ;;  %v275_v0 = vshll.u32 %v618_v63, %v263_v58  ;;  %v278_v2 = vshll.u32 %v619_v1, %v263_v58  ;;  %vm284_vm3 = vcmp.lt.s32.totalorder %v262_v57, 4 }
 0x10b   :  { %v366_v3 = vand.u32 31, %v364_v59  ;;  %v266_v8 = vshll.u32 %v621_v7, %v263_v58  ;;  %v669_v11 = vshrl.u32 %v364_v59, 5  ;;  %v269_v14 = vshll.u32 %v622_v9, %v263_v58 }
 0x10c   :  { %v276_v4 = vshrl.u32 %v619_v1, %v264_v60  ;;  %v279_v6 = vshrl.u32 %v620_v5, %v264_v60  ;;  %v267_v10 = vshrl.u32 %v622_v9, %v264_v60  ;;  %v265_v13 = vshrl.u32 %v621_v7, %v264_v60 }
 0x10d   :  { %v367_v12 = vsub.s32 32, %v366_v3  ;;  %v270_v19 = vshrl.u32 %v623_v18, %v264_v60  ;;  %v272_v22 = vshll.u32 %v623_v18, %v263_v58  ;;  %v273_v23 = vshrl.u32 %v618_v63, %v264_v60 }
 0x10e   :  { %v277_v15 = vor.u32 %v276_v4, %v275_v0  ;;  %v280_v16 = vor.u32 %v279_v6, %v278_v2  ;;  %v268_v17 = vor.u32 %v267_v10, %v266_v8  ;;  %v378_v25 = vshll.u32 %v618_v63, %v366_v3 }
 0x10f   :  { %v379_v20 = vshrl.u32 %v619_v1, %v367_v12  ;;  %v382_v21 = vshrl.u32 %v620_v5, %v367_v12  ;;  %v381_v26 = vshll.u32 %v619_v1, %v366_v3  ;;  %v271_v27 = vor.u32 %v270_v19, %v269_v14 }
 0x110   :  { %v290_v24 = vsel %vm284_vm3, %v277_v15, 920167782  ;;  %v294_v28 = vsel %vm284_vm3, %v280_v16, 1326507024  ;;  %vm387_vm4 = vcmp.lt.s32.totalorder %v669_v11, 4  ;;  %v274_v29 = vor.u32 %v273_v23, %v272_v22 }
 0x111   :  { %vm281_vm5 = vcmp.lt.s32.totalorder %v262_v57, 1  ;;  %v383_v30 = vor.u32 %v382_v21, %v381_v26  ;;  %vm283_vm6 = vcmp.lt.s32.totalorder %v262_v57, 3  ;;  %v380_v33 = vor.u32 %v379_v20, %v378_v25 }
 0x112   :  { %v285_v31 = vsel %vm281_vm5, %v265_v13, %v268_v17  ;;  %v289_v32 = vsel %vm281_vm5, %v268_v17, %v271_v27  ;;  %vm282_vm7 = vcmp.lt.s32.totalorder %v262_v57, 2  ;;  %v286_v34 = vsel %vm284_vm3, %v274_v29, 2102212464 }
 0x113   :  { %v291_v35 = vsel %vm283_vm6, %v274_v29, %v290_v24  ;;  %v287_v36 = vsel %vm283_vm6, %v271_v27, %v286_v34  ;;  %v293_v38 = vsel %vm281_vm5, %v271_v27, %v274_v29  ;;  %v295_v40 = vsel %vm283_vm6, %v277_v15, %v294_v28 }
 0x114   :  { %v292_v37 = vsel %vm282_vm7, %v289_v32, %v291_v35  ;;  %v288_v41 = vsel %vm282_vm7, %v285_v31, %v287_v36  ;;  %v296_v42 = vsel %vm282_vm7, %v293_v38, %v295_v40  ;;  %v397_v47 = vsel %vm387_vm4, %v383_v30, 1326507024 }
 0x115   :  { %v677_v45 = vmul.u32.u64.low %v666_v61, %v292_v37  ;;  %v678_v46 = vmul.u32.u64.high %v666_v61, %v292_v37, %v677_v45  ;;  %v683_v48 = vmul.u32.u64.low %v666_v61, %v296_v42  ;;  %v684_v49 = vmul.u32.u64.high %v666_v61, %v296_v42, %v683_v48 }
 0x116   :  { %v369_v52 = vshll.u32 %v621_v7, %v366_v3  ;;  %v370_v53 = vshrl.u32 %v622_v9, %v367_v12  ;;  %v372_v54 = vshll.u32 %v622_v9, %v366_v3  ;;  %v373_v55 = vshrl.u32 %v623_v18, %v367_v12 }
 0x117   :  { %v393_v56 = vsel %vm387_vm4, %v380_v33, 920167782  ;;  %v304_v57 = vmul.u32 %v666_v61, %v288_v41  ;;  %v375_v58 = vshll.u32 %v623_v18, %v366_v3  ;;  %v376_v59 = vshrl.u32 %v618_v63, %v367_v12 }
 0x118   :  { %v307_v60 = vadd.s32 1, %v678_v46  ;;  %v371_v0 = vor.u32 %v370_v53, %v369_v52  ;;  %v374_v1 = vor.u32 %v373_v55, %v372_v54  ;;  %vm386_vm8 = vcmp.lt.s32.totalorder %v669_v11, 3 }
 0x119   :  { %vm306_vm9 = vc.u32 %v684_v49, %v677_v45  ;;  %v377_v62 = vor.u32 %v376_v59, %v375_v58  ;;  %vm384_vm10 = vcmp.lt.s32.totalorder %v669_v11, 1  ;;  %v398_v2 = vsel %vm386_vm8, %v380_v33, %v397_v47 }
 0x11a   :  { %v308_v4 = vsel %vm306_vm9, %v307_v60, %v678_v46  ;;  %v368_v61 = vshrl.u32 %v621_v7, %v367_v12  ;;  %vm385_vm11 = vcmp.lt.s32.totalorder %v669_v11, 2  ;;  %v392_v63 = vsel %vm384_vm10, %v371_v0, %v374_v1 }
 0x11b   :  { %v309_v3 = vadd.s32 %v308_v4, %v304_v57  ;;  %v389_v5 = vsel %vm387_vm4, %v377_v62, 2102212464  ;;  %v394_v6 = vsel %vm386_vm8, %v377_v62, %v393_v56  ;;  %v396_v8 = vsel %vm384_vm10, %v374_v1, %v377_v62 }
 0x11c   :  { %v388_v9 = vsel %vm384_vm10, %v368_v61, %v371_v0  ;;  %v395_v10 = vsel %vm385_vm11, %v392_v63, %v394_v6  ;;  %v399_v13 = vsel %vm385_vm11, %v396_v8, %v398_v2  ;;  %v390_v15 = vsel %vm386_vm8, %v374_v1, %v389_v5 }
 0x11d   :  { %v310_v14 = vadd.s32 536870912, %v309_v3  ;;  %v705_v16 = vmul.u32.u64.low %v400_v51, %v399_v13  ;;  %v706_v7 = vmul.u32.u64.high %v400_v51, %v399_v13, %v705_v16  ;;  %v391_v19 = vsel %vm385_vm11, %v388_v9, %v390_v15 }
 0x11e   :  { %v708_v12 = vmul.u32.u64.low %v400_v51, %v395_v10  ;;  %v709_v17 = vmul.u32.u64.high %v400_v51, %v395_v10, %v708_v12  ;;  %v407_v23 = vmul.u32 %v400_v51, %v391_v19  ;;  %v305_v34 = vadd.s32 %v677_v45, %v684_v49 }
 0x11f   :  { %v711_v18 = vshrl.u32 %v310_v14, 30  ;;  %vm341_vm9 = vweird.f32 %v654_v39  ;;  %vm444_vm10 = vweird.f32 %v657_v43 }
 0x120   :  { %vm409_vm12 = vc.u32 %v706_v7, %v708_v12  ;;  %v410_v21 = vadd.s32 1, %v709_v17  ;;  %v408_v57 = vadd.s32 %v708_v12, %v706_v7 }
 0x121   :  { %v312_v20 = vshll.u32 %v711_v18, 30  ;;  %v335_v44 = vsub.s32 4, %v711_v18 }
 0x122   :  { %v411_v11 = vsel %vm409_vm12, %v410_v21, %v709_v17 }
 0x123   :  { %v313_v22 = vsub.s32 %v309_v3, %v312_v20  ;;  %v412_v25 = vadd.s32 %v411_v11, %v407_v23  ;;  %v336_v14 = vsel %vm251_vm15, %v335_v44, %v711_v18 }
 0x124   :  { %v338_v16 = vsel %vm724_vm0, 0, %v336_v14 }
 0x125   :  { %v315_v24 = vsub.s32 0, %v313_v22  ;;  %v413_v27 = vadd.s32 536870912, %v412_v25  ;;  %v342_v17 = vand.u32 3, %v338_v16 }
 0x127   :  { %v484_v26 = vmin.u32 %v315_v24, %v313_v22  ;;  %v414_v29 = vshrl.u32 %v413_v27, 30  ;;  %vm344_vm3 = vcmp.eq.s32.totalorder %v342_v17, 0  ;;  %vm347_vm4 = vcmp.eq.s32.totalorder %v342_v17, 2 }
 0x128   :  { %vm343_vm5 = vcmp.lt.s32.totalorder %v342_v17, 2 }
 0x129   :  { %v317_v28 = vclz %v484_v26  ;;  %v415_v31 = vshll.u32 %v414_v29, 30  ;;  %v438_v13 = vsub.s32 4, %v414_v29 }
 0x12b   :  { %v485_v30 = vadd.s32 4294967294, %v317_v28  ;;  %v416_v33 = vsub.s32 %v412_v25, %v415_v31  ;;  %v439_v7 = vsel %vm354_vm1, %v438_v13, %v414_v29 }
 0x12c   :  { %v441_v19 = vsel %vm353_vm2, 0, %v439_v7 }
 0x12d   :  { %vm486_vm13 = vcmp.lt.s32.totalorder %v485_v30, 0  ;;  %v418_v37 = vsub.s32 0, %v416_v33  ;;  %v445_v21 = vand.u32 3, %v441_v19 }
 0x12e   :  { %v320_v32 = vsel %vm486_vm13, 0, %v485_v30 }
 0x12f   :  { %v321_v35 = vsub.s32 32, %v320_v32  ;;  %v325_v36 = vsub.s32 4294967266, %v320_v32  ;;  %v322_v38 = vshll.u32 %v313_v22, %v320_v32  ;;  %v488_v42 = vmin.u32 %v418_v37, %v416_v33 }
 0x130   :  { %vm450_vm6 = vcmp.eq.s32.totalorder %v445_v21, 2  ;;  %vm447_vm7 = vcmp.eq.s32.totalorder %v445_v21, 0  ;;  %vm446_vm8 = vcmp.lt.s32.totalorder %v445_v21, 2 }
 0x131   :  { %v323_v40 = vshrl.u32 %v305_v34, %v321_v35  ;;  %v326_v41 = vadd.s32 127, %v325_v36  ;;  %v420_v48 = vclz %v488_v42 }
 0x133   :  { %v324_v46 = vor.u32 %v323_v40, %v322_v38  ;;  %v327_v47 = vshll.u32 %v326_v41, 23  ;;  %v489_v52 = vadd.s32 4294967294, %v420_v48 }
 0x135   :  { %v328_v51 = vor.u32 4788187, %v327_v47  ;;  %v331_v54 = vcvt.s32.f32 %v324_v46  ;;  %vm490_vm14 = vcmp.lt.s32.totalorder %v489_v52, 0 }
 0x136   :  { %v423_v56 = vsel %vm490_vm14, 0, %v489_v52 }
 0x137   :  { %v329_v53 = vand.u32 2147483647, %v328_v51  ;;  %v424_v45 = vsub.s32 32, %v423_v56  ;;  %v428_v49 = vsub.s32 4294967266, %v423_v56  ;;  %v425_v59 = vshll.u32 %v416_v33, %v423_v56 }
 0x139   :  { %v332_v55 = vmul.f32 %v331_v54, %v329_v53  ;;  %v426_v60 = vshrl.u32 %v408_v57, %v424_v45  ;;  %v429_v0 = vadd.s32 127, %v428_v49 }
 0x13b   :  { %v333_v58 = vxor.u32 2147483648, %v332_v55  ;;  %v427_v2 = vor.u32 %v426_v60, %v425_v59  ;;  %v430_v4 = vshll.u32 %v429_v0, 23 }
 0x13d   :  { %v334_v1 = vsel %vm251_vm15, %v333_v58, %v332_v55  ;;  %v431_v63 = vor.u32 4788187, %v430_v4  ;;  %v434_v5 = vcvt.s32.f32 %v427_v2 }
 0x13e   :  { %v337_v61 = vsel %vm724_vm0, %v654_v39, %v334_v1 }
 0x13f   :  { %518 = vcosq.f32 %v337_v61  ;;  %v432_v3 = vand.u32 2147483647, %v431_v63 }
 0x140   :  { %520 = vsinq.f32 %v337_v61 }
 0x141   :  { %v435_v6 = vmul.f32 %v434_v5, %v432_v3 }
 0x143   :  { %v436_v8 = vxor.u32 2147483648, %v435_v6 }
 0x145   :  { %v437_v9 = vsel %vm354_vm1, %v436_v8, %v435_v6 }
 0x146   :  { %v440_v10 = vsel %vm353_vm2, %v657_v43, %v437_v9 }
 0x147   :  { %522 = vcosq.f32 %v440_v10 }
 0x148   :  { %524 = vsinq.f32 %v440_v10 }
 0x14c   :  { %v519_v15 = vpop.eup %518 }
 0x14d   :  { %v521_v12 = vpop.eup %520  ;;  %v348_v50 = vxor.u32 2147483648, %v519_v15 }
 0x14e   :  { %v345_v20 = vxor.u32 2147483648, %v521_v12 }
 0x14f   :  { %v349_v11 = vsel %vm347_vm4, %v348_v50, %v521_v12 }
 0x150   :  { %v346_v23 = vsel %vm344_vm3, %v519_v15, %v345_v20 }
 0x151   :  { %v350_v26 = vsel %vm343_vm5, %v346_v23, %v349_v11 }
 0x152   :  { %v351_v30 = vsel %vm341_vm9, nan, %v350_v26 }
 0x154   :  { %v523_v22 = vpop.eup %522 }
 0x155   :  { %v525_v24 = vpop.eup %524  ;;  %v451_v25 = vxor.u32 2147483648, %v523_v22 }
 0x156   :  { %v448_v18 = vxor.u32 2147483648, %v525_v24 }
 0x157   :  { %v452_v27 = vsel %vm450_vm6, %v451_v25, %v525_v24 }
 0x158   :  { %v449_v28 = vsel %vm447_vm7, %v523_v22, %v448_v18 }
 0x159   :  { %v453_v29 = vsel %vm446_vm8, %v449_v28, %v452_v27 }
 0x15a   :  { %v454_v31 = vsel %vm444_vm10, nan, %v453_v29 }
 0x15b   :  { %v457_v32 = vcombine.low %v351_v30, %v454_v31 }
 0x15d   :  { %459 = vst [vmem:[#allocation8] sm:$0xff] %v457_v32 }
 0x15e   :  { %597 = shalt.err (!%p594_p5)
}
 0x15f   :  { %469 = dma.vmem_to_hbm [thread:$0]  %s467_s2, 128, %s749_s3, [#allocation4]  }
 0x160   :  { %610 = dma.done.wait [#allocation4], 128  }
 0x161   :  { %611 = vsyncadd [#allocation4], 4294967168 }
 0x162   :  { %473 = vsyncpa [#allocation3], 1 }
 0x163   :  { %474 = vsyncpa [#allocation6], 1 }
 0x164   :  { %475 = vsyncpa [#allocation4], 1 }

</bundles_post_ra>
